<compile_context>
chip_gen: v7x
topology: tpu7x:2x2x1
jax: 0.10.0
libtpu: 0.0.40
codegen_flags: <defaults>
</compile_context>

<pallas_src>
import jax
import jax.numpy as jnp
import numpy as np
from jax.experimental import pallas as pl
from jax.experimental.pallas import tpu as pltpu


# ---------------------------------------------------------------------------
# Problem sizes (small, consistent with the module's forward)
# ---------------------------------------------------------------------------
B = 2              # batch
L = 8              # sequence length (input_ids)
HALF = L // 2      # current segment length == historical memory length
D = 32             # d_model (kept small for the synthetic kernel)
P = 10             # persistent_len (module default)
C = 2              # num_classes
V = 100            # synthetic vocab size

VPAD = 128         # vocab rows padded to 128 -> one-hot gather is one MXU pass
NTOK = B * L       # 16 gathered token rows (both batches)
PMEM_PAD = 16      # persistent memory rows padded 10 -> 16 (aligned offset)
NKEY = NTOK + PMEM_PAD   # 32 key/value rows in the shared context slab
OUT_ROWS = 8       # output sublane rows (sliced to B outside)
OUT_LANES = 128    # output lanes (sliced to C outside)
NEG_INF = -1e30


# ---------------------------------------------------------------------------
# Pallas kernel: one invocation, whole forward
# ---------------------------------------------------------------------------
def titan_kernel(ids_ref, emb_ref, pmem_ref, wq_ref, wk_ref, wvoc_ref,
                 mask_ref, pool_ref, bc_ref, out_ref):
    # --- embedding gather for all B*L tokens via one-hot MXU matmul ---------
    ids = ids_ref[...]                                               # (NTOK, 1) int32
    vocab = jax.lax.broadcasted_iota(jnp.int32, (NTOK, VPAD), 1)     # (NTOK, VPAD)
    onehot = (vocab == ids).astype(jnp.float32)                      # (16, 128)
    x = jnp.dot(onehot, emb_ref[...],
                preferred_element_type=jnp.float32)                  # (16, D)

    # --- shared key/value slab: [tokens of both batches ; persistent mem] ---
    # (aligned sublane offsets 0 and 16; cross-batch / pad keys are masked)
    ctx = jnp.concatenate([x, pmem_ref[...]], axis=0)                # (NKEY, D)

    # --- projections (scale folded into Wq; Wv@Wo@Wc folded into wvoc) ------
    q = jnp.dot(x, wq_ref[...], preferred_element_type=jnp.float32)      # (16, D)
    k = jnp.dot(ctx, wk_ref[...], preferred_element_type=jnp.float32)    # (32, D)
    v = jnp.dot(ctx, wvoc_ref[...], preferred_element_type=jnp.float32)  # (32, 128)

    # --- block-diagonal attention, one softmax chain, no transpose ----------
    s = jnp.einsum("qd,kd->qk", q, k,
                   preferred_element_type=jnp.float32)               # (16, 32)
    s = s + mask_ref[...]
    s = s - jnp.max(s, axis=-1, keepdims=True)
    e = jnp.exp(s)
    p = e / jnp.sum(e, axis=-1, keepdims=True)                       # exact softmax

    # --- mean-pool current-segment query rows via MXU, fused classifier -----
    pooled_p = jnp.dot(pool_ref[...], p,
                       preferred_element_type=jnp.float32)           # (8, NKEY)
    out_ref[...] = (jnp.dot(pooled_p, v,
                            preferred_element_type=jnp.float32)
                    + bc_ref[...])                                   # (8, 128)


_VMEM_SPEC = pl.BlockSpec(memory_space=pltpu.MemorySpace.VMEM)

_titan_kernel_call = pl.pallas_call(
    titan_kernel,
    out_shape=jax.ShapeDtypeStruct((OUT_ROWS, OUT_LANES), jnp.float32),
    in_specs=[_VMEM_SPEC] * 9,
    out_specs=_VMEM_SPEC,
)


# ---------------------------------------------------------------------------
# Constant packing — done ONCE at init, not per forward call
# ---------------------------------------------------------------------------
def _build_mask():
    """Additive mask (NTOK, NKEY): query row i (batch b=i//L) may attend to
    its own batch's L token keys and the P persistent-memory keys."""
    m = np.full((NTOK, NKEY), NEG_INF, dtype=np.float32)
    for i in range(NTOK):
        b = i // L
        m[i, b * L:(b + 1) * L] = 0.0          # own batch tokens (hist + cur)
        m[i, NTOK:NTOK + P] = 0.0              # persistent memory
    return jnp.asarray(m)


def _build_pool():
    """Pooling matrix (OUT_ROWS, NTOK): row b averages the current-segment
    query rows of batch b; rows >= B are zero (output padding)."""
    pm = np.zeros((OUT_ROWS, NTOK), dtype=np.float32)
    for b in range(B):
        pm[b, b * L: b * L + HALF] = 1.0 / float(HALF)
    return jnp.asarray(pm)


def pack_params(params):
    emb_pad = jnp.zeros((VPAD, D), jnp.float32).at[:V].set(params["emb"])
    pmem_pad = jnp.zeros((PMEM_PAD, D), jnp.float32).at[:P].set(params["pmem"])
    wq_scaled = params["wq"] * (float(D) ** -0.5)             # fold 1/sqrt(D)
    wvoc = params["wv"] @ params["wo"] @ params["wc"]         # (D, C) exact fold
    wvoc_pad = jnp.zeros((D, OUT_LANES), jnp.float32).at[:, :C].set(wvoc)
    bc_pad = jnp.zeros((1, OUT_LANES), jnp.float32).at[:, :C].set(params["bc"])
    return {
        "emb": emb_pad, "pmem": pmem_pad, "wq": wq_scaled, "wk": params["wk"],
        "wvoc": wvoc_pad, "mask": _build_mask(), "pool": _build_pool(),
        "bc": bc_pad,
    }


# ---------------------------------------------------------------------------
# Forward (single pallas_call inside one jit)
# ---------------------------------------------------------------------------
@jax.jit
def titan_forward(input_ids, packed):
    ids2d = input_ids.reshape(NTOK, 1).astype(jnp.int32)
    logits_pad = _titan_kernel_call(
        ids2d, packed["emb"], packed["pmem"], packed["wq"], packed["wk"],
        packed["wvoc"], packed["mask"], packed["pool"], packed["bc"])
    return logits_pad[:B, :C]


def titan_forward_ref(input_ids, params):
    """Pure-JAX reference (unfolded weights) for correctness checking."""
    x = params["emb"][input_ids]
    cur = x[:, :HALF, :]
    hist = x[:, HALF:, :]
    pmem = jnp.broadcast_to(params["pmem"], (B, P, D))
    ctx = jnp.concatenate([pmem, hist, cur], axis=1)
    q = jnp.einsum("btd,de->bte", cur, params["wq"])
    k = jnp.einsum("bsd,de->bse", ctx, params["wk"])
    v = jnp.einsum("bsd,de->bse", ctx, params["wv"])
    s = jnp.einsum("btd,bsd->bts", q, k) * (float(D) ** -0.5)
    p = jax.nn.softmax(s, axis=-1)
    o = jnp.einsum("bts,bsd->btd", p, v)
    o = jnp.einsum("btd,de->bte", o, params["wo"])
    pooled = jnp.mean(o, axis=1)
    return pooled @ params["wc"] + params["bc"][0]


# ---------------------------------------------------------------------------
# Deterministic parameter init (synthetic; no checkpoint load)
# ---------------------------------------------------------------------------
def init_params(key):
    ks = jax.random.split(key, 8)
    inv_sqrt_d = float(D) ** -0.5
    return {
        "emb":  jax.random.normal(ks[0], (V, D), jnp.float32),            # nn.Embedding
        "pmem": jax.random.normal(ks[1], (P, D), jnp.float32) * 0.02,     # persistent memory
        "wq":   jax.random.normal(ks[2], (D, D), jnp.float32) * inv_sqrt_d,
        "wk":   jax.random.normal(ks[3], (D, D), jnp.float32) * inv_sqrt_d,
        "wv":   jax.random.normal(ks[4], (D, D), jnp.float32) * inv_sqrt_d,
        "wo":   jax.random.normal(ks[5], (D, D), jnp.float32) * inv_sqrt_d,
        "wc":   jax.random.normal(ks[6], (D, C), jnp.float32) * inv_sqrt_d,  # nn.Linear(d_model, num_classes)
        "bc":   jax.random.normal(ks[7], (1, C), jnp.float32) * 0.01,
    }


if __name__ == "__main__":
    key = jax.random.PRNGKey(0)
    kp, kx = jax.random.split(key)
    params = init_params(kp)
    packed = jax.tree.map(jax.block_until_ready, pack_params(params))  # pack once
    input_ids = jax.random.randint(kx, (B, L), 0, V, dtype=jnp.int32)

    logits = jax.block_until_ready(titan_forward(input_ids, packed))
    logits_ref = jax.block_until_ready(titan_forward_ref(input_ids, params))

    assert logits.shape == (B, C), logits.shape
    assert jnp.allclose(logits, logits_ref, rtol=1e-3, atol=1e-3), (logits, logits_ref)
    print("KERNEL_OK")
</pallas_src>

<mosaic_0001>
module attributes {stable_mosaic.version = 11 : i64} {
  func.func @titan_kernel(%arg0: memref<16x1xi32, #tpu.memory_space<vmem>>, %arg1: memref<128x32xf32, #tpu.memory_space<vmem>>, %arg2: memref<16x32xf32, #tpu.memory_space<vmem>>, %arg3: memref<32x32xf32, #tpu.memory_space<vmem>>, %arg4: memref<32x32xf32, #tpu.memory_space<vmem>>, %arg5: memref<32x128xf32, #tpu.memory_space<vmem>>, %arg6: memref<16x32xf32, #tpu.memory_space<vmem>>, %arg7: memref<8x16xf32, #tpu.memory_space<vmem>>, %arg8: memref<1x128xf32, #tpu.memory_space<vmem>>, %arg9: memref<8x128xf32, #tpu.memory_space<vmem>>) attributes {dimension_semantics = [], scalar_prefetch = 0 : i64, scratch_operands = 0 : i64, tpu.core_type = #tpu.core_type<tc>} {
    %c0 = arith.constant 0 : index
    %c0_0 = arith.constant 0 : index
    %0 = vector.load %arg0[%c0, %c0_0] : memref<16x1xi32, #tpu.memory_space<vmem>>, vector<16x1xi32>
    %1 = tpu.iota {dimensions = array<i32: 1>} : vector<16x128xi32>
    %2 = vector.broadcast %0 : vector<16x1xi32> to vector<16x128xi32>
    %3 = arith.cmpi eq, %1, %2 : vector<16x128xi32>
    %4 = arith.extui %3 : vector<16x128xi1> to vector<16x128xi32>
    %5 = arith.sitofp %4 : vector<16x128xi32> to vector<16x128xf32>
    %c0_1 = arith.constant 0 : index
    %c0_2 = arith.constant 0 : index
    %6 = vector.load %arg1[%c0_1, %c0_2] : memref<128x32xf32, #tpu.memory_space<vmem>>, vector<128x32xf32>
    %cst = arith.constant dense<0.000000e+00> : vector<16x32xf32>
    %7 = tpu.matmul %5, %6, %cst {dimension_numbers = #tpu.dot_dimension_numbers<[1], [0], [0], [1], [0, 0, 1, 1], [], []>} : vector<16x128xf32>, vector<128x32xf32>, vector<16x32xf32> -> vector<16x32xf32>
    %c0_3 = arith.constant 0 : index
    %c0_4 = arith.constant 0 : index
    %8 = vector.load %arg2[%c0_3, %c0_4] : memref<16x32xf32, #tpu.memory_space<vmem>>, vector<16x32xf32>
    %9 = tpu.concatenate %7, %8 in 0 : vector<16x32xf32>, vector<16x32xf32> -> vector<32x32xf32>
    %c0_5 = arith.constant 0 : index
    %c0_6 = arith.constant 0 : index
    %10 = vector.load %arg3[%c0_5, %c0_6] : memref<32x32xf32, #tpu.memory_space<vmem>>, vector<32x32xf32>
    %cst_7 = arith.constant dense<0.000000e+00> : vector<16x32xf32>
    %11 = tpu.matmul %7, %10, %cst_7 {dimension_numbers = #tpu.dot_dimension_numbers<[1], [0], [0], [1], [0, 0, 1, 1], [], []>} : vector<16x32xf32>, vector<32x32xf32>, vector<16x32xf32> -> vector<16x32xf32>
    %c0_8 = arith.constant 0 : index
    %c0_9 = arith.constant 0 : index
    %12 = vector.load %arg4[%c0_8, %c0_9] : memref<32x32xf32, #tpu.memory_space<vmem>>, vector<32x32xf32>
    %cst_10 = arith.constant dense<0.000000e+00> : vector<32x32xf32>
    %13 = tpu.matmul %9, %12, %cst_10 {dimension_numbers = #tpu.dot_dimension_numbers<[1], [0], [0], [1], [0, 0, 1, 1], [], []>} : vector<32x32xf32>, vector<32x32xf32>, vector<32x32xf32> -> vector<32x32xf32>
    %c0_11 = arith.constant 0 : index
    %c0_12 = arith.constant 0 : index
    %14 = vector.load %arg5[%c0_11, %c0_12] : memref<32x128xf32, #tpu.memory_space<vmem>>, vector<32x128xf32>
    %cst_13 = arith.constant dense<0.000000e+00> : vector<32x128xf32>
    %15 = tpu.matmul %9, %14, %cst_13 {dimension_numbers = #tpu.dot_dimension_numbers<[1], [0], [0], [1], [0, 0, 1, 1], [], []>} : vector<32x32xf32>, vector<32x128xf32>, vector<32x128xf32> -> vector<32x128xf32>
    "tpu.trace_start"() <{level = 10 : i32, message = "qd,kd->qk"}> : () -> ()
    %cst_14 = arith.constant dense<0.000000e+00> : vector<16x32xf32>
    %16 = tpu.matmul %11, %13, %cst_14 {dimension_numbers = #tpu.dot_dimension_numbers<[1], [1], [0], [0], [0, 0, 1, 0], [], []>} : vector<16x32xf32>, vector<32x32xf32>, vector<16x32xf32> -> vector<16x32xf32>
    "tpu.trace_stop"() : () -> ()
    %c0_15 = arith.constant 0 : index
    %c0_16 = arith.constant 0 : index
    %17 = vector.load %arg6[%c0_15, %c0_16] : memref<16x32xf32, #tpu.memory_space<vmem>>, vector<16x32xf32>
    %18 = arith.addf %16, %17 : vector<16x32xf32>
    %cst_17 = arith.constant dense<0xFF800000> : vector<16xf32>
    %19 = vector.multi_reduction <maximumf>, %18, %cst_17 [1] : vector<16x32xf32> to vector<16xf32>
    %20 = vector.shape_cast %19 : vector<16xf32> to vector<16x1xf32>
    %21 = vector.broadcast %20 : vector<16x1xf32> to vector<16x32xf32>
    %22 = arith.subf %18, %21 : vector<16x32xf32>
    %23 = math.exp %22 : vector<16x32xf32>
    %cst_18 = arith.constant dense<0.000000e+00> : vector<16xf32>
    %24 = vector.multi_reduction <add>, %23, %cst_18 [1] : vector<16x32xf32> to vector<16xf32>
    %25 = vector.shape_cast %24 : vector<16xf32> to vector<16x1xf32>
    %26 = vector.broadcast %25 : vector<16x1xf32> to vector<16x32xf32>
    %27 = arith.divf %23, %26 : vector<16x32xf32>
    %c0_19 = arith.constant 0 : index
    %c0_20 = arith.constant 0 : index
    %28 = vector.load %arg7[%c0_19, %c0_20] : memref<8x16xf32, #tpu.memory_space<vmem>>, vector<8x16xf32>
    %cst_21 = arith.constant dense<0.000000e+00> : vector<8x32xf32>
    %29 = tpu.matmul %28, %27, %cst_21 {dimension_numbers = #tpu.dot_dimension_numbers<[1], [0], [0], [1], [0, 0, 1, 1], [], []>} : vector<8x16xf32>, vector<16x32xf32>, vector<8x32xf32> -> vector<8x32xf32>
    %cst_22 = arith.constant dense<0.000000e+00> : vector<8x128xf32>
    %30 = tpu.matmul %29, %15, %cst_22 {dimension_numbers = #tpu.dot_dimension_numbers<[1], [0], [0], [1], [0, 0, 1, 1], [], []>} : vector<8x32xf32>, vector<32x128xf32>, vector<8x128xf32> -> vector<8x128xf32>
    %c0_23 = arith.constant 0 : index
    %c0_24 = arith.constant 0 : index
    %31 = vector.load %arg8[%c0_23, %c0_24] : memref<1x128xf32, #tpu.memory_space<vmem>>, vector<1x128xf32>
    %32 = vector.broadcast %31 : vector<1x128xf32> to vector<8x128xf32>
    %33 = arith.addf %30, %32 : vector<8x128xf32>
    %c0_25 = arith.constant 0 : index
    %c0_26 = arith.constant 0 : index
    %34 = vector.load %arg9[%c0_25, %c0_26] : memref<8x128xf32, #tpu.memory_space<vmem>>, vector<8x128xf32>
    tpu.vector_store %arg9[%c0_25, %c0_26], %33 {strides = array<i32>} : memref<8x128xf32, #tpu.memory_space<vmem>>, vector<8x128xf32>,
    return
  }
}

</mosaic_0001>

<bundles_post_ra>
// kernel: titan_forward.1
= control target key start
LH: loop header
LB: loop body
LE: loop exit
PB: predicated region body
PF: predicated region fallthrough
CT: control target
= control target key end

     0   :  { %v959_v0 = vmov 0   ;;  %v34_v33 = vlaneseq  ;;  %v960_v36 = vmov 1.0   ;;  %vm145_vm2 = vcmask 261120   ;;  %s1146_s0 = inlined_call_operand.vmem [shape: s32[16,1], index: 0, kind: input, shape index: {}]   ;;  %s1147_s1 = inlined_call_operand.vmem [shape: f32[128,32], index: 1, kind: input, shape index: {}]   ;;  %s1148_s3 = inlined_call_operand.vmem [shape: f32[32,32], index: 3, kind: input, shape index: {}]   ;;  %s1149_s4 = inlined_call_operand.vmem [shape: f32[32,32], index: 4, kind: input, shape index: {}]   ;;  %s1150_s5 = inlined_call_operand.vmem [shape: f32[32,128], index: 5, kind: input, shape index: {}]   ;;  %s1151_s2 = inlined_call_operand.vmem [shape: f32[16,32], index: 2, kind: input, shape index: {}]   ;;  %s1152_s6 = inlined_call_operand.vmem [shape: f32[16,32], index: 6, kind: input, shape index: {}]   ;;  %s1153_s7 = inlined_call_operand.vmem [shape: f32[8,16], index: 7, kind: input, shape index: {}]   ;;  %s1154_s8 = inlined_call_operand.vmem [shape: f32[1,128], index: 8, kind: input, shape index: {}]   ;;  %s1155_s9 = inlined_call_operand.vmem [shape: f32[8,128], index: 9, kind: output, shape index: {}]  }
   0x1   :  { %950 = vset.pattern.permute.xlu0 %v959_v0  ;;  %v32_v1 = vld [vmem:[%s1146_s0] sm:$0xff]  ;;  %v49_v3 = vld [vmem:[%s1147_s1 + $0x8] sm:$0xff]  ;;  %v50_v4 = vld [vmem:[%s1147_s1 + $0x10] sm:$0xff]  ;;  %vm962_vm4 = vmmov 0   ;;  %vm529_vm5 = vcmask 130048  }
   0x2   :  { %v48_v2 = vld [vmem:[%s1147_s1] sm:$0xff]  ;;  %37 = vperm.xlu0 %950, %v32_v1   ;;  %v51_v5 = vld [vmem:[%s1147_s1 + $0x18] sm:$0xff]  ;;  %v33_v6 = vld [vmem:[%s1146_s0 + $0x8] sm:$0xff]  ;;  %v35_v34 = vand.u32 127, %v34_v33 }
   0x3   :  { %v868_v7 = vpack.c.bf16 %v49_v3, %v48_v2  ;;  %v872_v8 = vpack.c.bf16 %v51_v5, %v50_v4  ;;  %v52_v9 = vld [vmem:[%s1147_s1 + $0x20] sm:$0xff]  ;;  %v53_v10 = vld [vmem:[%s1147_s1 + $0x28] sm:$0xff]  ;;  %v54_v12 = vld [vmem:[%s1147_s1 + $0x30] sm:$0xff] }
   0x4   :  { %v876_v11 = vpack.c.bf16 %v53_v10, %v52_v9  ;;  %v55_v13 = vld [vmem:[%s1147_s1 + $0x38] sm:$0xff]  ;;  %v141_v14 = vld [vmem:[%s1148_s3] sm:$0xff]  ;;  %v142_v15 = vld [vmem:[%s1148_s3 + $0x8] sm:$0xff] }
   0x5   :  { %869 = vmatprep.subr.bf16.mxu0 %v868_v7  ;;  %v143_v16 = vld [vmem:[%s1148_s3 + $0x10] sm:$0xff]  ;;  %v900_v17 = vpack.c.bf16 %v142_v15, %v141_v14  ;;  %v144_v18 = vld [vmem:[%s1148_s3 + $0x18] sm:$0xff]  ;;  %v880_v20 = vpack.c.bf16 %v55_v13, %v54_v12  ;;  %v56_v21 = vld [vmem:[%s1147_s1 + $0x40] sm:$0xff] }
   0x6   :  { %40 = vperm.xlu0 %950, %v33_v6   ;;  %871 = vmatpush3.bf16.msra.mxu0 %v868_v7  ;;  %v904_v19 = vpack.c.bf16 %v144_v18, %v143_v16  ;;  %v57_v22 = vld [vmem:[%s1147_s1 + $0x48] sm:$0xff]  ;;  %v58_v24 = vld [vmem:[%s1147_s1 + $0x50] sm:$0xff]  ;;  %v59_v25 = vld [vmem:[%s1147_s1 + $0x58] sm:$0xff] }
   0x7   :  { %873 = vmatprep.subr.bf16.mxu0 %v872_v8  ;;  %901 = vmatprep.subr.bf16.mxu1 %v900_v17  ;;  %v884_v23 = vpack.c.bf16 %v57_v22, %v56_v21  ;;  %v888_v26 = vpack.c.bf16 %v59_v25, %v58_v24  ;;  %v60_v27 = vld [vmem:[%s1147_s1 + $0x60] sm:$0xff]  ;;  %v61_v28 = vld [vmem:[%s1147_s1 + $0x68] sm:$0xff]  ;;  %v62_v30 = vld [vmem:[%s1147_s1 + $0x70] sm:$0xff]  ;;  %v961_v22 = vmov 0.0|0.0  }
   0x8   :  { %903 = vmatpush3.bf16.msra.mxu1 %v900_v17  ;;  %v892_v29 = vpack.c.bf16 %v61_v28, %v60_v27  ;;  %v63_v31 = vld [vmem:[%s1147_s1 + $0x78] sm:$0xff]  ;;  %v227_v38 = vld [vmem:[%s1149_s4] sm:$0xff]  ;;  %v228_v39 = vld [vmem:[%s1149_s4 + $0x8] sm:$0xff] }
   0x9   :  { %905 = vmatprep.subr.bf16.mxu1 %v904_v19  ;;  %v896_v32 = vpack.c.bf16 %v63_v31, %v62_v30  ;;  %v908_v40 = vpack.c.bf16 %v228_v39, %v227_v38  ;;  %v229_v41 = vld [vmem:[%s1149_s4 + $0x10] sm:$0xff]  ;;  %v230_v42 = vld [vmem:[%s1149_s4 + $0x18] sm:$0xff]  ;;  %v322_v46 = vld [vmem:[%s1150_s5] sm:$0xff] }
   0xa   :  { %875 = vmatpush3.bf16.msra.mxu0 %v872_v8  ;;  %v912_v45 = vpack.c.bf16 %v230_v42, %v229_v41  ;;  %v323_v47 = vld [vmem:[%s1150_s5 + $0x8] sm:$0xff]  ;;  %v324_v49 = vld [vmem:[%s1150_s5 + $0x10] sm:$0xff]  ;;  %v325_v50 = vld [vmem:[%s1150_s5 + $0x18] sm:$0xff] }
   0xb   :  { %877 = vmatprep.subr.bf16.mxu0 %v876_v11  ;;  %v916_v48 = vpack.c.bf16 %v323_v47, %v322_v46  ;;  %v139_v51 = vld [vmem:[%s1151_s2] sm:$0xff]  ;;  %v920_v52 = vpack.c.bf16 %v325_v50, %v324_v49  ;;  %v140_v53 = vld [vmem:[%s1151_s2 + $0x8] sm:$0xff]  ;;  %vm925_vm3 = vmpackc.low %vm145_vm2, %vm145_vm2 }
   0xc   :  { %907 = vmatpush3.bf16.msra.mxu1 %v904_v19  ;;  %v411_v4 = vld [vmem:[%s1152_s6] sm:$0xff]  ;;  %v412_v6 = vld [vmem:[%s1152_s6 + $0x8] sm:$0xff] }
   0xd   :  { %909 = vmatprep.subr.bf16.mxu1 %v908_v40  ;;  %v528_v31 = vld [vmem:[%s1153_s7] sm:$0xff] }
   0xe   :  { %879 = vmatpush3.bf16.msra.mxu0 %v876_v11 }
   0xf   :  { %881 = vmatprep.subr.bf16.mxu0 %v880_v20 }
  0x12   :  { %883 = vmatpush3.bf16.msra.mxu0 %v880_v20 }
  0x13   :  { %885 = vmatprep.subr.bf16.mxu0 %v884_v23 }
  0x16   :  { %887 = vmatpush3.bf16.msra.mxu0 %v884_v23  ;;  %v963_v23 = vmov 0.0  }
  0x17   :  { %889 = vmatprep.subr.bf16.mxu0 %v888_v26 }
  0x1a   :  { %891 = vmatpush3.bf16.msra.mxu0 %v888_v26 }
  0x1b   :  { %893 = vmatprep.subr.bf16.mxu0 %v892_v29 }
  0x1e   :  { %895 = vmatpush3.bf16.msra.mxu0 %v892_v29 }
  0x1f   :  { %897 = vmatprep.subr.bf16.mxu0 %v896_v32 }
  0x22   :  { %899 = vmatpush3.bf16.msra.mxu0 %v896_v32 }
  0x23   :  { %936 = vmatprep.subr.bf16.mxu0 %v961_v22 }
  0x81   :  { %v38_v35 = vpop.permute.xlu0 %37 }
  0x82   :  { %vm42_vm0 = vcmp.eq.s32.totalorder %v35_v34, %v38_v35 }
  0x83   :  { %797 = vmatprep.mubr.msk.f32.mxu0 %vm42_vm0, %v960_v36 }
  0x85   :  { %v41_v37 = vpop.permute.xlu0 %40 }
  0x86   :  { %vm43_vm1 = vcmp.eq.s32.totalorder %v35_v34, %v41_v37  ;;  %v709_v34 = vld [vmem:[%s1154_s8] ss:$0 sm:$0xff] }
  0x87   :  { %798 = vmatmul.mubr.msk.f32.vlgmr.msra.gmra.mrb[0].mxu0 %vm43_vm1, %v960_v36 }
  0x88   :  { %854 = vmatprep.mubr.msk.f32.mxu0 %vm962_vm4, %v963_v23 }
 0x15a   :  { %v799_v43 = vpop.f32.mrb[0].mxu0 }
 0x15b   :  { %v130_v44 = vpop.f32.mrb[1].mxu0 }
 0x15c   :  { %808 = vmatprep.mubr.msk.f32.mxu1 %vm145_vm2, %v130_v44 }
 0x15d   :  { %809 = vmatmul.mubr.msk.f32.vlgmr.msra.gmra.mrb[0].mxu1 %vm145_vm2, %v799_v43 }
 0x15e   :  { %911 = vmatpush3.bf16.msra.mxu1 %v908_v40  ;;  %819 = vmatprep.mubr.msk.f32.mxu1 %vm145_vm2, %v130_v44 }
 0x15f   :  { %913 = vmatprep.subr.bf16.mxu1 %v912_v45 }
 0x162   :  { %915 = vmatpush3.bf16.msra.mxu1 %v912_v45 }
 0x163   :  { %917 = vmatprep.subr.bf16.mxu1 %v916_v48 }
 0x165   :  { %820 = vmatmul.mubr.msk.f32.vlgmr.msra.gmra.mrb[2].mxu1 %vm145_vm2, %v799_v43 }
 0x166   :  { %919 = vmatpush3.bf16.msra.mxu1 %v916_v48  ;;  %822 = vmatprep.mubr.msk.f32.mxu1 %vm145_vm2, %v139_v51 }
 0x167   :  { %921 = vmatprep.subr.bf16.mxu1 %v920_v52 }
 0x169   :  { %823 = vmatmul.mubr.msk.f32.gmra.mrb[4].mxu1 %vm145_vm2, %v140_v53 }
 0x16a   :  { %923 = vmatpush3.bf16.msra.mxu1 %v920_v52  ;;  %833 = vmatprep.mubr.msk.f32.mxu1 %vm145_vm2, %v130_v44 }
 0x16d   :  { %834 = vmatmul.mubr.msk.f32.vlgmr.msra.gmra.mrb[6].mxu1 %vm145_vm2, %v799_v43 }
 0x16e   :  { %836 = vmatprep.mubr.msk.f32.mxu1 %vm145_vm2, %v139_v51 }
 0x171   :  { %837 = vmatmul.mubr.msk.f32.gmra.mrb[8].mxu1 %vm145_vm2, %v140_v53 }
 0x230   :  { %v810_v54 = vpop.f32.mrb[0].mxu1 }
 0x231   :  { %v218_v55 = vpop.f32.mrb[1].mxu1 }
 0x232   :  { %847 = vmatprep.mubr.msk.f32.mxu1 %vm145_vm2, %v218_v55 }
 0x238   :  { %v821_v56 = vpop.f32.mrb[2].mxu1 }
 0x239   :  { %v303_v57 = vpop.f32.mrb[3].mxu1 }
 0x23a   :  { %v924_v58 = vpack.c.bf16 %v821_v56, %v303_v57 }
 0x23c   :  { %926 = vmatprep.subr.msk.bf16.mxu1 %vm925_vm3, %v924_v58  ;;  %v824_v59 = vpop.f32.mrb[4].mxu1 }
 0x23d   :  { %929 = vmatpush3.bf16.xpose.msk.msra.mxu1 %vm925_vm3, %v924_v58  ;;  %v313_v60 = vpop.f32.mrb[5].mxu1 }
 0x23e   :  { %v930_v61 = vpack.c.bf16 %v824_v59, %v313_v60 }
 0x240   :  { %v835_v62 = vpop.f32.mrb[6].mxu1  ;;  %932 = vmatprep.subr.msk.bf16.mxu1 %vm925_vm3, %v930_v61 }
 0x241   :  { %v392_v63 = vpop.f32.mrb[7].mxu1 }
 0x242   :  { %v940_v0 = vpack.c.bf16 %v835_v62, %v392_v63 }
 0x244   :  { %v838_v1 = vpop.f32.mrb[8].mxu1 }
 0x245   :  { %935 = vmatpush3.bf16.xpose.msk.msra.mxu1 %vm925_vm3, %v930_v61  ;;  %v402_v2 = vpop.f32.mrb[9].mxu1 }
 0x246   :  { %v943_v3 = vpack.c.bf16 %v838_v1, %v402_v2 }
 0x24c   :  { %848 = vmatmul.mubr.msk.f32.vlgmr.msra.gmra.mrb[10].mxu1 %vm145_vm2, %v810_v54 }
 0x31f   :  { %v849_v5 = vpop.f32.mrb[10].mxu1 }
 0x320   :  { %v497_v7 = vpop.f32.mrb[11].mxu1  ;;  %v503_v9 = vadd.f32 %v849_v5, %v412_v6 }
 0x321   :  { %v498_v8 = vadd.f32 %v497_v7, %v411_v4 }
 0x322   :  { %v509_v11 = vsel %vm145_vm2, %v503_v9, -inf }
 0x323   :  { %v506_v10 = vsel %vm145_vm2, %v498_v8, -inf }
 0x324   :  { %507 = vmax.xlane.f32.xlu1 %v506_v10 }
 0x328   :  { %510 = vmax.xlane.f32.xlu1 %v509_v11 }
 0x3b1   :  { %v508_v12 = vpop.xlane.xlu1 %507 }
 0x3b2   :  { %v512_v13 = vsub.f32 %v498_v8, %v508_v12 }
 0x3b4   :  { %v514_v14 = vmul.f32 1.442695, %v512_v13 }
 0x3b5   :  { %v511_v15 = vpop.xlane.xlu1 %510 }
 0x3b6   :  { %951 = vpow2.f32 %v514_v14  ;;  %v513_v16 = vsub.f32 %v503_v9, %v511_v15 }
 0x3b8   :  { %v516_v17 = vmul.f32 1.442695, %v513_v16 }
 0x3ba   :  { %953 = vpow2.f32 %v516_v17 }
 0x3c0   :  { %v952_v18 = vpop.eup %951 }
 0x3c1   :  { %v518_v19 = vsel %vm145_vm2, %v952_v18, 0.0 }
 0x3c2   :  { %519 = vadd.xlane.f32.xlu0 %v518_v19 }
 0x3c4   :  { %v954_v20 = vpop.eup %953 }
 0x3c5   :  { %v521_v21 = vsel %vm145_vm2, %v954_v20, 0.0 }
 0x3c6   :  { %522 = vadd.xlane.f32.xlu1 %v521_v21 }
 0x44f   :  { %v520_v24 = vpop.xlane.xlu0 %519 }
 0x450   :  { %955 = vrcp.f32 %v520_v24 }
 0x453   :  { %v523_v25 = vpop.xlane.xlu1 %522 }
 0x454   :  { %957 = vrcp.f32 %v523_v25 }
 0x45a   :  { %v956_v26 = vpop.eup %955 }
 0x45b   :  { %v525_v28 = vmul.f32 %v956_v26, %v952_v18 }
 0x45e   :  { %v958_v27 = vpop.eup %957 }
 0x45f   :  { %v527_v29 = vmul.f32 %v958_v27, %v954_v20 }
 0x461   :  { %v937_v30 = vpack.c.bf16 %v527_v29, %v525_v28 }
 0x463   :  { %938 = vmatpush3.bf16.msra.mxu0 %v937_v30 }
 0x464   :  { %939 = vmatprep.subr.bf16.mxu0 %v961_v22 }
 0x466   :  { %855 = vmatmul.mubr.msk.f32.vlgmr.msra.gmra.mrb[2].mxu0 %vm529_vm5, %v528_v31 }
 0x467   :  { %941 = vmatpush3.bf16.msra.mxu0 %v940_v0  ;;  %865 = vmatprep.mubr.msk.f32.mxu0 %vm962_vm4, %v963_v23 }
 0x468   :  { %942 = vmatprep.subr.bf16.mxu0 %v961_v22 }
 0x46b   :  { %944 = vmatpush3.bf16.msra.mxu0 %v943_v3 }
 0x539   :  { %v599_v32 = vpop.f32.mrb[2].mxu0 }
 0x53a   :  { %v856_v33 = vpop.f32.mrb[3].mxu0  ;;  %866 = vmatmul.mubr.msk.f32.vlgmr.msra.gmra.mrb[4].mxu0 %vm145_vm2, %v599_v32 }
 0x60d   :  { %v679_v35 = vpop.f32.mrb[4].mxu0 }
 0x60e   :  { %v680_v36 = vadd.f32 %v709_v34, %v679_v35  ;;  %v867_v37 = vpop.f32.mrb[5].mxu0 }
 0x610   :  { %683 = vst [vmem:[%s1155_s9] sm:$0xff] %v680_v36 }

</bundles_post_ra>
